<compile_context>
chip_gen: v5e
topology: v5e:2x2
jax: 0.10.0
libtpu: 0.0.40
codegen_flags: <defaults>
</compile_context>

<pallas_src>
import jax
import jax.numpy as jnp
import numpy as np
from jax.experimental import pallas as pl
from jax.experimental.pallas import tpu as pltpu


def _cbamb_kernel(x_ref, ax_ref, w1_ref, b1_ref, w2_ref, b2_ref,
                  cw_ref, cb_ref, o_ref):
    x = x_ref[...]                       # (Bt, C, L)  -- gate source
    ax = ax_ref[...]                     # (Bt, C, L)  -- gated tensor
    Bt, C, L = x.shape

    # ---------------- Channel attention ----------------
    # AdaptiveAvgPool1d(1) over length of x -> (Bt, C)
    y = jnp.mean(x, axis=2)                                               # (Bt, C)
    # fc: Linear(C->H), ReLU, Linear(H->C); weights pre-transposed in wrapper
    h = jnp.dot(y, w1_ref[...], preferred_element_type=jnp.float32) + b1_ref[...]   # (Bt, H)
    h = jnp.maximum(h, 0.0)
    z = jnp.dot(h, w2_ref[...], preferred_element_type=jnp.float32) + b2_ref[...]   # (Bt, C)
    gate_c = jax.nn.sigmoid(z)                                            # (Bt, C)
    y_ca = ax * gate_c[:, :, None]                                        # (Bt, C, L)

    # ---------------- Spatial attention ----------------
    mp = jnp.max(y_ca, axis=1)                                            # (Bt, L)
    ap = jnp.mean(y_ca, axis=1)                                           # (Bt, L)

    # Conv1d(2 -> 1, kernel_size=3, padding='same') via lane rolls + edge masks.
    # Roll each pooled map independently (no concat/slice sublane shuffles).
    idx = jax.lax.broadcasted_iota(jnp.int32, mp.shape, 1)
    zero = jnp.zeros_like(mp)
    mp_l = jnp.where(idx == 0, zero, pltpu.roll(mp, shift=1, axis=1))          # mp[l-1]
    mp_r = jnp.where(idx == L - 1, zero, pltpu.roll(mp, shift=L - 1, axis=1))  # mp[l+1]
    ap_l = jnp.where(idx == 0, zero, pltpu.roll(ap, shift=1, axis=1))          # ap[l-1]
    ap_r = jnp.where(idx == L - 1, zero, pltpu.roll(ap, shift=L - 1, axis=1))  # ap[l+1]

    conv = (cw_ref[0] * mp_l + cw_ref[1] * mp + cw_ref[2] * mp_r
            + cw_ref[3] * ap_l + cw_ref[4] * ap + cw_ref[5] * ap_r
            + cb_ref[0])                                                  # (Bt, L)

    gate_s = jax.nn.sigmoid(conv)                                         # (Bt, L)
    o_ref[...] = (y_ca * gate_s[:, None, :]).astype(o_ref.dtype)


def _tpu_hw_info():
    """(physical VMEM bytes per TensorCore, TensorCores per device) with safe
    fallbacks if the query is unavailable."""
    vmem_bytes = 64 * 1024 * 1024           # conservative default (v7x per-TC)
    num_cores = 1
    try:
        vmem_bytes = int(pltpu.get_tpu_info().vmem_capacity_bytes)
    except Exception:
        pass
    try:
        kind = jax.devices()[0].device_kind.lower()
        if "v7" in kind:                    # v7x: 2 TensorCores per chip
            num_cores = 2
    except Exception:
        pass
    return vmem_bytes, num_cores


def _pick_batch_tile(B, C, L, itemsize, vmem_bytes, num_cores):
    """Pick the batch-tile size Bt (a divisor of B).

    Working set per grid step:
      3 streamed arrays (x, another_x, out) x 2 pipeline buffers x block
      + ~3 block-sized f32 kernel temporaries (y_ca, pooled/rolled maps).
    Keep that under ~60% of physical VMEM; prefer Bt % 8 == 0 (sublane-aligned
    2-D intermediates); only force multiple grid steps on multi-TC chips.
    """
    row_stream = C * L * itemsize                       # bytes/row per streamed array
    row_temps = C * L * 4                               # f32 temporaries per row
    per_row_working = 3 * 2 * row_stream + 3 * row_temps
    budget = int(0.60 * vmem_bytes)
    max_bt = max(1, budget // per_row_working)

    divisors = [d for d in range(1, B + 1) if B % d == 0]
    fitting = [d for d in divisors if d <= max_bt] or [1]

    def pick(cands):
        aligned = [d for d in cands if d % 8 == 0]
        return max(aligned) if aligned else max(cands)

    bt = pick(fitting)

    if num_cores > 1:
        # Keep both TensorCores busy with double-buffering: >= 2 steps per core
        # and an even split, as long as blocks stay reasonably large (>= 1 MiB).
        min_block = 1 << 20
        good = [d for d in fitting
                if B // d >= 2 * num_cores and (B // d) % num_cores == 0
                and d * row_stream >= min_block]
        if not good:
            good = [d for d in fitting
                    if B // d >= num_cores and (B // d) % num_cores == 0]
        if good:
            bt = pick(good)
    return bt


def cbamb_forward(x, another_x, w1, b1, w2, b2, conv_w, conv_b):
    """x, another_x: (B, C, L) float32.  Params use PyTorch layouts:
    w1 (H, C), b1 (H,), w2 (C, H), b2 (C,), conv_w (1, 2, 3), conv_b (1,)."""
    B, C, L = x.shape
    H = w1.shape[0]
    itemsize = jnp.dtype(x.dtype).itemsize

    vmem_bytes, num_cores = _tpu_hw_info()
    Bt = _pick_batch_tile(B, C, L, itemsize, vmem_bytes, num_cores)
    grid = (B // Bt,)
    # TODO(synk): add an L-tiled (running-mean + 1-element halo) path for shapes
    # where a single (1, C, L) row exceeds the per-block VMEM budget.

    # Lane-dense parameter layouts for the kernel.
    w1t = jnp.transpose(w1)                         # (C, H)  : y @ w1t
    w2t = jnp.transpose(w2)                         # (H, C)  : h @ w2t
    b1r = b1.reshape(1, H)
    b2r = b2.reshape(1, C)
    cw = conv_w.reshape(6).astype(jnp.float32)      # [mp taps 0..2, ap taps 0..2]
    cb = conv_b.reshape(1).astype(jnp.float32)

    # VMEM budget: x, another_x, out double-buffered + block-sized f32 temps +
    # small params; capped generation-aware at ~75% of physical VMEM.
    block_bytes = Bt * C * L * itemsize
    temp_bytes = 3 * Bt * C * L * 4
    param_bytes = 4 * (w1t.size + w2t.size + b1r.size + b2r.size)
    vmem_need = 3 * 2 * block_bytes + temp_bytes + 2 * param_bytes
    vmem_limit = int(min(max(int(1.5 * vmem_need), 32 * 1024 * 1024),
                         int(0.75 * vmem_bytes)))

    return pl.pallas_call(
        _cbamb_kernel,
        out_shape=jax.ShapeDtypeStruct((B, C, L), x.dtype),
        grid=grid,
        in_specs=[
            pl.BlockSpec((Bt, C, L), lambda b: (b, 0, 0)),          # x
            pl.BlockSpec((Bt, C, L), lambda b: (b, 0, 0)),          # another_x
            pl.BlockSpec((C, H), lambda b: (0, 0)),                 # fc1 weight^T
            pl.BlockSpec((1, H), lambda b: (0, 0)),                 # fc1 bias
            pl.BlockSpec((H, C), lambda b: (0, 0)),                 # fc2 weight^T
            pl.BlockSpec((1, C), lambda b: (0, 0)),                 # fc2 bias
            pl.BlockSpec(memory_space=pltpu.MemorySpace.SMEM),      # conv weight (6,)
            pl.BlockSpec(memory_space=pltpu.MemorySpace.SMEM),      # conv bias (1,)
        ],
        out_specs=pl.BlockSpec((Bt, C, L), lambda b: (b, 0, 0)),
        compiler_params=pltpu.CompilerParams(
            dimension_semantics=("parallel",),
            vmem_limit_bytes=vmem_limit),
    )(x, another_x, w1t, b1r, w2t, b2r, cw, cb)


def cbamb_reference(x, ax, w1, b1, w2, b2, conv_w, conv_b):
    """Pure-JAX reference mirroring the PyTorch CBAMb module."""
    B, C, L = x.shape
    # channel attention: gate from x, applied to another_x
    y = jnp.mean(x, axis=2)                                        # (B, C)
    h = jax.nn.relu(y @ w1.T + b1)                                 # (B, H)
    z = h @ w2.T + b2                                              # (B, C)
    y_ca = ax * jax.nn.sigmoid(z)[:, :, None]                      # (B, C, L)
    # spatial attention
    mp = jnp.max(y_ca, axis=1, keepdims=True)                      # (B, 1, L)
    ap = jnp.mean(y_ca, axis=1, keepdims=True)                     # (B, 1, L)
    cat = jnp.concatenate([mp, ap], axis=1)                        # (B, 2, L)
    cat_pad = jnp.pad(cat, ((0, 0), (0, 0), (1, 1)))
    conv = (sum(conv_w[0, c, k] * cat_pad[:, c, k:k + L]
                for c in range(2) for k in range(3)) + conv_b[0])  # (B, L)
    return y_ca * jax.nn.sigmoid(conv)[:, None, :]


if __name__ == "__main__":
    B, C, L = 8, 32, 128
    reduction_ratio = 16
    H = C // reduction_ratio

    key = jax.random.PRNGKey(0)
    kx, ka, k1, k2, k3, k4, k5, k6 = jax.random.split(key, 8)

    x = jax.random.normal(kx, (B, C, L), dtype=jnp.float32)
    another_x = jax.random.normal(ka, (B, C, L), dtype=jnp.float32)
    # nn.Linear weights: (out_features, in_features); biases 1-D
    w1 = 0.1 * jax.random.normal(k1, (H, C), dtype=jnp.float32)
    b1 = 0.1 * jax.random.normal(k2, (H,), dtype=jnp.float32)
    w2 = 0.1 * jax.random.normal(k3, (C, H), dtype=jnp.float32)
    b2 = 0.1 * jax.random.normal(k4, (C,), dtype=jnp.float32)
    # nn.Conv1d(2, 1, kernel_size=3) weight: (out=1, in=2, k=3); bias (1,)
    conv_w = 0.1 * jax.random.normal(k5, (1, 2, 3), dtype=jnp.float32)
    conv_b = 0.1 * jax.random.normal(k6, (1,), dtype=jnp.float32)

    out = cbamb_forward(x, another_x, w1, b1, w2, b2, conv_w, conv_b)
    out = jax.block_until_ready(out)

    ref = cbamb_reference(x, another_x, w1, b1, w2, b2, conv_w, conv_b)
    np.testing.assert_allclose(np.asarray(out), np.asarray(ref), rtol=1e-5, atol=1e-5)

    print("KERNEL_OK")
</pallas_src>

<mosaic_0001>
module attributes {stable_mosaic.version = 11 : i64} {
  func.func @_cbamb_kernel(%arg0: i32, %arg1: memref<8x32x128xf32, #tpu.memory_space<vmem>>, %arg2: memref<8x32x128xf32, #tpu.memory_space<vmem>>, %arg3: memref<32x2xf32, #tpu.memory_space<vmem>>, %arg4: memref<1x2xf32, #tpu.memory_space<vmem>>, %arg5: memref<2x32xf32, #tpu.memory_space<vmem>>, %arg6: memref<1x32xf32, #tpu.memory_space<vmem>>, %arg7: memref<6xf32, #tpu.memory_space<smem>>, %arg8: memref<1xf32, #tpu.memory_space<smem>>, %arg9: memref<8x32x128xf32, #tpu.memory_space<vmem>>) attributes {dimension_semantics = [#tpu.dimension_semantics<parallel>], iteration_bounds = array<i64: 1>, scalar_prefetch = 0 : i64, scratch_operands = 0 : i64, tpu.core_type = #tpu.core_type<tc>, window_params = [{transform_indices = @transform_0, window_bounds = array<i64: 8, 32, 128>}, {transform_indices = @transform_1, window_bounds = array<i64: 8, 32, 128>}, {pipeline_mode = #tpu.pipeline_mode<synchronous>, transform_indices = @transform_2, window_bounds = array<i64: 32, 2>}, {pipeline_mode = #tpu.pipeline_mode<synchronous>, transform_indices = @transform_3, window_bounds = array<i64: 1, 2>}, {pipeline_mode = #tpu.pipeline_mode<synchronous>, transform_indices = @transform_4, window_bounds = array<i64: 2, 32>}, {pipeline_mode = #tpu.pipeline_mode<synchronous>, transform_indices = @transform_5, window_bounds = array<i64: 1, 32>}, {transform_indices = @transform_6, window_bounds = array<i64: 6>}, {transform_indices = @transform_7, window_bounds = array<i64: 1>}, {transform_indices = @transform_8, window_bounds = array<i64: 8, 32, 128>}]} {
    %c0 = arith.constant 0 : index
    %c0_0 = arith.constant 0 : index
    %c0_1 = arith.constant 0 : index
    %0 = vector.load %arg1[%c0, %c0_0, %c0_1] : memref<8x32x128xf32, #tpu.memory_space<vmem>>, vector<8x32x128xf32>
    %c0_2 = arith.constant 0 : index
    %c0_3 = arith.constant 0 : index
    %c0_4 = arith.constant 0 : index
    %1 = vector.load %arg2[%c0_2, %c0_3, %c0_4] : memref<8x32x128xf32, #tpu.memory_space<vmem>>, vector<8x32x128xf32>
    %cst = arith.constant dense<0.000000e+00> : vector<8x32xf32>
    %2 = vector.multi_reduction <add>, %0, %cst [2] : vector<8x32x128xf32> to vector<8x32xf32>
    %cst_5 = arith.constant 1.280000e+02 : f32
    %3 = vector.broadcast %cst_5 : f32 to vector<8x32xf32>
    %4 = arith.divf %2, %3 : vector<8x32xf32>
    %c0_6 = arith.constant 0 : index
    %c0_7 = arith.constant 0 : index
    %5 = vector.load %arg3[%c0_6, %c0_7] : memref<32x2xf32, #tpu.memory_space<vmem>>, vector<32x2xf32>
    %cst_8 = arith.constant dense<0.000000e+00> : vector<8x2xf32>
    %6 = tpu.matmul %4, %5, %cst_8 {dimension_numbers = #tpu.dot_dimension_numbers<[1], [0], [0], [1], [0, 0, 1, 1], [], []>} : vector<8x32xf32>, vector<32x2xf32>, vector<8x2xf32> -> vector<8x2xf32>
    %c0_9 = arith.constant 0 : index
    %c0_10 = arith.constant 0 : index
    %7 = vector.load %arg4[%c0_9, %c0_10] : memref<1x2xf32, #tpu.memory_space<vmem>>, vector<1x2xf32>
    %8 = vector.broadcast %7 : vector<1x2xf32> to vector<8x2xf32>
    %9 = arith.addf %6, %8 : vector<8x2xf32>
    %cst_11 = arith.constant 0.000000e+00 : f32
    %10 = vector.broadcast %cst_11 : f32 to vector<8x2xf32>
    %11 = arith.maximumf %9, %10 : vector<8x2xf32>
    %c0_12 = arith.constant 0 : index
    %c0_13 = arith.constant 0 : index
    %12 = vector.load %arg5[%c0_12, %c0_13] : memref<2x32xf32, #tpu.memory_space<vmem>>, vector<2x32xf32>
    %cst_14 = arith.constant dense<0.000000e+00> : vector<8x32xf32>
    %13 = tpu.matmul %11, %12, %cst_14 {dimension_numbers = #tpu.dot_dimension_numbers<[1], [0], [0], [1], [0, 0, 1, 1], [], []>} : vector<8x2xf32>, vector<2x32xf32>, vector<8x32xf32> -> vector<8x32xf32>
    %c0_15 = arith.constant 0 : index
    %c0_16 = arith.constant 0 : index
    %14 = vector.load %arg6[%c0_15, %c0_16] : memref<1x32xf32, #tpu.memory_space<vmem>>, vector<1x32xf32>
    %15 = vector.broadcast %14 : vector<1x32xf32> to vector<8x32xf32>
    %16 = arith.addf %13, %15 : vector<8x32xf32>
    %17 = arith.negf %16 : vector<8x32xf32>
    %18 = math.exp %17 : vector<8x32xf32>
    %cst_17 = arith.constant 1.000000e+00 : f32
    %19 = vector.broadcast %cst_17 : f32 to vector<8x32xf32>
    %20 = arith.addf %19, %18 : vector<8x32xf32>
    %21 = arith.divf %19, %20 : vector<8x32xf32>
    %22 = vector.shape_cast %21 : vector<8x32xf32> to vector<8x32x1xf32>
    %23 = vector.broadcast %22 : vector<8x32x1xf32> to vector<8x32x128xf32>
    %24 = arith.mulf %1, %23 : vector<8x32x128xf32>
    %cst_18 = arith.constant dense<0xFF800000> : vector<8x128xf32>
    %25 = vector.multi_reduction <maximumf>, %24, %cst_18 [1] : vector<8x32x128xf32> to vector<8x128xf32>
    %cst_19 = arith.constant dense<0.000000e+00> : vector<8x128xf32>
    %26 = vector.multi_reduction <add>, %24, %cst_19 [1] : vector<8x32x128xf32> to vector<8x128xf32>
    %cst_20 = arith.constant 3.200000e+01 : f32
    %27 = vector.broadcast %cst_20 : f32 to vector<8x128xf32>
    %28 = arith.divf %26, %27 : vector<8x128xf32>
    %29 = tpu.iota {dimensions = array<i32: 1>} : vector<8x128xi32>
    %cst_21 = arith.constant 0.000000e+00 : f32
    %30 = vector.broadcast %cst_21 : f32 to vector<8x128xf32>
    %c0_i32 = arith.constant 0 : i32
    %31 = vector.broadcast %c0_i32 : i32 to vector<8x128xi32>
    %32 = arith.cmpi eq, %29, %31 : vector<8x128xi32>
    %c1_i32 = arith.constant 1 : i32
    %33 = tpu.dynamic_rotate %25 by %c1_i32 dim 1 : vector<8x128xf32>, i32 -> vector<8x128xf32>
    %34 = arith.select %32, %30, %33 : vector<8x128xi1>, vector<8x128xf32>
    %c127_i32 = arith.constant 127 : i32
    %35 = vector.broadcast %c127_i32 : i32 to vector<8x128xi32>
    %36 = arith.cmpi eq, %29, %35 : vector<8x128xi32>
    %c127_i32_22 = arith.constant 127 : i32
    %37 = tpu.dynamic_rotate %25 by %c127_i32_22 dim 1 : vector<8x128xf32>, i32 -> vector<8x128xf32>
    %38 = arith.select %36, %30, %37 : vector<8x128xi1>, vector<8x128xf32>
    %c0_i32_23 = arith.constant 0 : i32
    %39 = vector.broadcast %c0_i32_23 : i32 to vector<8x128xi32>
    %40 = arith.cmpi eq, %29, %39 : vector<8x128xi32>
    %c1_i32_24 = arith.constant 1 : i32
    %41 = tpu.dynamic_rotate %28 by %c1_i32_24 dim 1 : vector<8x128xf32>, i32 -> vector<8x128xf32>
    %42 = arith.select %40, %30, %41 : vector<8x128xi1>, vector<8x128xf32>
    %c127_i32_25 = arith.constant 127 : i32
    %43 = vector.broadcast %c127_i32_25 : i32 to vector<8x128xi32>
    %44 = arith.cmpi eq, %29, %43 : vector<8x128xi32>
    %c127_i32_26 = arith.constant 127 : i32
    %45 = tpu.dynamic_rotate %28 by %c127_i32_26 dim 1 : vector<8x128xf32>, i32 -> vector<8x128xf32>
    %46 = arith.select %44, %30, %45 : vector<8x128xi1>, vector<8x128xf32>
    %c0_27 = arith.constant 0 : index
    %47 = memref.load %arg7[%c0_27] : memref<6xf32, #tpu.memory_space<smem>>
    %48 = vector.broadcast %47 : f32 to vector<8x128xf32>
    %49 = arith.mulf %48, %34 : vector<8x128xf32>
    %c1 = arith.constant 1 : index
    %50 = memref.load %arg7[%c1] : memref<6xf32, #tpu.memory_space<smem>>
    %51 = vector.broadcast %50 : f32 to vector<8x128xf32>
    %52 = arith.mulf %51, %25 : vector<8x128xf32>
    %53 = arith.addf %49, %52 : vector<8x128xf32>
    %c2 = arith.constant 2 : index
    %54 = memref.load %arg7[%c2] : memref<6xf32, #tpu.memory_space<smem>>
    %55 = vector.broadcast %54 : f32 to vector<8x128xf32>
    %56 = arith.mulf %55, %38 : vector<8x128xf32>
    %57 = arith.addf %53, %56 : vector<8x128xf32>
    %c3 = arith.constant 3 : index
    %58 = memref.load %arg7[%c3] : memref<6xf32, #tpu.memory_space<smem>>
    %59 = vector.broadcast %58 : f32 to vector<8x128xf32>
    %60 = arith.mulf %59, %42 : vector<8x128xf32>
    %61 = arith.addf %57, %60 : vector<8x128xf32>
    %c4 = arith.constant 4 : index
    %62 = memref.load %arg7[%c4] : memref<6xf32, #tpu.memory_space<smem>>
    %63 = vector.broadcast %62 : f32 to vector<8x128xf32>
    %64 = arith.mulf %63, %28 : vector<8x128xf32>
    %65 = arith.addf %61, %64 : vector<8x128xf32>
    %c5 = arith.constant 5 : index
    %66 = memref.load %arg7[%c5] : memref<6xf32, #tpu.memory_space<smem>>
    %67 = vector.broadcast %66 : f32 to vector<8x128xf32>
    %68 = arith.mulf %67, %46 : vector<8x128xf32>
    %69 = arith.addf %65, %68 : vector<8x128xf32>
    %c0_28 = arith.constant 0 : index
    %70 = memref.load %arg8[%c0_28] : memref<1xf32, #tpu.memory_space<smem>>
    %71 = vector.broadcast %70 : f32 to vector<8x128xf32>
    %72 = arith.addf %69, %71 : vector<8x128xf32>
    %73 = arith.negf %72 : vector<8x128xf32>
    %74 = math.exp %73 : vector<8x128xf32>
    %cst_29 = arith.constant 1.000000e+00 : f32
    %75 = vector.broadcast %cst_29 : f32 to vector<8x128xf32>
    %76 = arith.addf %75, %74 : vector<8x128xf32>
    %77 = arith.divf %75, %76 : vector<8x128xf32>
    %78 = vector.shape_cast %77 : vector<8x128xf32> to vector<8x1x128xf32>
    %79 = vector.broadcast %78 : vector<8x1x128xf32> to vector<8x32x128xf32>
    %80 = arith.mulf %24, %79 : vector<8x32x128xf32>
    %c0_30 = arith.constant 0 : index
    %c0_31 = arith.constant 0 : index
    %c0_32 = arith.constant 0 : index
    %81 = vector.load %arg9[%c0_30, %c0_31, %c0_32] : memref<8x32x128xf32, #tpu.memory_space<vmem>>, vector<8x32x128xf32>
    tpu.vector_store %arg9[%c0_30, %c0_31, %c0_32], %80 {strides = array<i32>} : memref<8x32x128xf32, #tpu.memory_space<vmem>>, vector<8x32x128xf32>,
    return
  }
  func.func @transform_0(%arg0: i32) -> (i32, i32, i32) {
    %c0_i32 = arith.constant 0 : i32
    %c0_i32_0 = arith.constant 0 : i32
    %c0_i32_1 = arith.constant 0 : i32
    return %arg0, %c0_i32, %c0_i32_0 : i32, i32, i32
  }
  func.func @transform_1(%arg0: i32) -> (i32, i32, i32) {
    %c0_i32 = arith.constant 0 : i32
    %c0_i32_0 = arith.constant 0 : i32
    %c0_i32_1 = arith.constant 0 : i32
    return %arg0, %c0_i32, %c0_i32_0 : i32, i32, i32
  }
  func.func @transform_2(%arg0: i32) -> (i32, i32) {
    %c0_i32 = arith.constant 0 : i32
    %c0_i32_0 = arith.constant 0 : i32
    %c0_i32_1 = arith.constant 0 : i32
    return %c0_i32, %c0_i32_0 : i32, i32
  }
  func.func @transform_3(%arg0: i32) -> (i32, i32) {
    %c0_i32 = arith.constant 0 : i32
    %c0_i32_0 = arith.constant 0 : i32
    %c0_i32_1 = arith.constant 0 : i32
    return %c0_i32, %c0_i32_0 : i32, i32
  }
  func.func @transform_4(%arg0: i32) -> (i32, i32) {
    %c0_i32 = arith.constant 0 : i32
    %c0_i32_0 = arith.constant 0 : i32
    %c0_i32_1 = arith.constant 0 : i32
    return %c0_i32, %c0_i32_0 : i32, i32
  }
  func.func @transform_5(%arg0: i32) -> (i32, i32) {
    %c0_i32 = arith.constant 0 : i32
    %c0_i32_0 = arith.constant 0 : i32
    %c0_i32_1 = arith.constant 0 : i32
    return %c0_i32, %c0_i32_0 : i32, i32
  }
  func.func @transform_6(%arg0: i32) -> i32 {
    %c0_i32 = arith.constant 0 : i32
    %c0_i32_0 = arith.constant 0 : i32
    return %c0_i32 : i32
  }
  func.func @transform_7(%arg0: i32) -> i32 {
    %c0_i32 = arith.constant 0 : i32
    %c0_i32_0 = arith.constant 0 : i32
    return %c0_i32 : i32
  }
  func.func @transform_8(%arg0: i32) -> (i32, i32, i32) {
    %c0_i32 = arith.constant 0 : i32
    %c0_i32_0 = arith.constant 0 : i32
    %c0_i32_1 = arith.constant 0 : i32
    return %arg0, %c0_i32, %c0_i32_0 : i32, i32, i32
  }
}

</mosaic_0001>

<bundles_post_ra>
// kernel: tpu_custom_call.1
= control target key start
LH: loop header
LB: loop body
LE: loop exit
PB: predicated region body
PF: predicated region fallthrough
CT: control target
= control target key end

     0   :  { %14 = vsyncpa [#allocation4], 0  ;;  %s1775_s0 = inlined_call_operand.hbm [shape: f32[8,32,128], index: 0, kind: input, shape index: {}]   ;;  %s1776_s1 = inlined_call_operand.hbm [shape: f32[8,32,128], index: 1, kind: input, shape index: {}]   ;;  %s1777_s2 = inlined_call_operand.vmem [shape: f32[32,2], index: 2, kind: input, shape index: {}]   ;;  %s1778_s3 = inlined_call_operand.vmem [shape: f32[1,2], index: 3, kind: input, shape index: {}]   ;;  %s1779_s4 = inlined_call_operand.vmem [shape: f32[2,32], index: 4, kind: input, shape index: {}]   ;;  %s1780_s5 = inlined_call_operand.vmem [shape: f32[1,32], index: 5, kind: input, shape index: {}]   ;;  %s1781_s6 = inlined_call_operand.vmem [shape: f32[6], index: 6, kind: input, shape index: {}]   ;;  %s1782_s7 = inlined_call_operand.<no memory space> [shape: f32[1], index: 7, kind: input, shape index: {}]   ;;  %s1783_s8 = inlined_call_operand.hbm [shape: f32[8,32,128], index: 8, kind: output, shape index: {}]  }
   0x1   :  { %15 = vsyncpa [#allocation8], 0 }
   0x2   :  { %16 = vsyncpa [#allocation6], 0 }
   0x3   :  { %17 = vsyncpa [#allocation5], 0  ;;  %s22_s29 = sshll.u32 %s1775_s0, 4  ;;  %s1225_s30 = smov [#allocation3]   ;;  %s23_s29 = int_to_ptr.hbm [resolvable:$true] %s22_s29 }
   0x4   :  { %s24_s9 = sshll.u32 %s1225_s30, 4  ;;  %s35_s12 = sshll.u32 %s1776_s1, 4  ;;  %s25_s9 = int_to_ptr.vmem [resolvable:$true] %s24_s9  ;;  %s36_s12 = int_to_ptr.hbm [resolvable:$true] %s35_s12 }
   0x5   :  { %s1226_s13 = smov 128   ;;  %s1227_s14 = smov 8  }
   0x6   :  { %30 = dma.hbm_to_vmem [thread:$0]  %s23_s29, 4096, %s25_s9, [#allocation4], %s1226_s13, %s1226_s13, %s1227_s14  }
   0x7   :  { %s1228_s15 = smov [#allocation7]   ;;  %s57_s0 = sshll.u32 %s1781_s6, 4  ;;  %s58_s0 = int_to_ptr.vmem [resolvable:$true] %s57_s0 }
   0x8   :  { %s37_s16 = sshll.u32 %s1228_s15, 4  ;;  %s1229_s1 = smov [#allocation9]   ;;  %s38_s16 = int_to_ptr.vmem [resolvable:$true] %s37_s16 }
   0x9   :  { %43 = dma.hbm_to_vmem [thread:$0]  %s36_s12, 4096, %s38_s16, [#allocation8], %s1226_s13, %s1226_s13, %s1227_s14  }
   0xa   :  { %60 = dma.vmem_to_smem %s58_s0, 16, %s1229_s1, [#allocation6]  }
   0xb   :  { %1217 = dma.done.wait [#allocation4], 4096  }
   0xc   :  { %1218 = vsyncadd [#allocation4], 4294963200 }
   0xd   :  { %1219 = dma.done.wait [#allocation8], 4096  }
   0xe   :  { %1220 = vsyncadd [#allocation8], 4294963200 }
   0xf   :  { %1221 = dma.done.wait [#allocation6], 16  }
  0x10   :  { %1222 = vsyncadd [#allocation6], 4294967280 }
  0x11   :  { %75 = sfence }
  0x12   :  { %v80_v0 = vld [vmem:[#allocation3 + $0x20] sm:$0xff]  ;;  %v78_v1 = vld [vmem:[#allocation3 + $0x10] sm:$0xff]  ;;  %v81_v3 = vld [vmem:[#allocation3 + $0x28] sm:$0xff]  ;;  %v1230_v32 = vmov 128.0   ;;  %v283_v40 = vlaneseq  ;;  %vm288_vm1 = vcmask 130112   ;;  %vm292_vm2 = vcmask 195712  }
  0x13   :  { %v76_v2 = vld [vmem:[#allocation3] sm:$0xff]  ;;  %148 = vadd.xlane.f32.xlu1 %v80_v0  ;;  %144 = vadd.xlane.f32.xlu2 %v78_v1  ;;  %v82_v4 = vld [vmem:[#allocation3 + $0x30] sm:$0xff]  ;;  %v77_v5 = vld [vmem:[#allocation3 + $0x8] sm:$0xff]  ;;  %1121 = vrcp.f32 %v1230_v32  ;;  %vm296_vm3 = vcmask 261312   ;;  %vm347_vm4 = vcmask 1041409   ;;  %vm349_vm5 = vcmask 1042434  }
  0x14   :  { %140 = vadd.xlane.f32.xlu0 %v76_v2  ;;  %v85_v6 = vld [vmem:[#allocation3 + $0x48] sm:$0xff]  ;;  %v79_v7 = vld [vmem:[#allocation3 + $0x18] sm:$0xff]  ;;  %v84_v8 = vld [vmem:[#allocation3 + $0x40] sm:$0xff]  ;;  %v1298_v43 = vand.u32 127, %v283_v40  ;;  %vm351_vm6 = vcmask 1043459   ;;  %vm353_vm7 = vcmask 1044484  }
  0x15   :  { %v86_v9 = vld [vmem:[#allocation3 + $0x50] sm:$0xff]  ;;  %v88_v10 = vld [vmem:[#allocation3 + $0x60] sm:$0xff]  ;;  %v83_v11 = vld [vmem:[#allocation3 + $0x38] sm:$0xff]  ;;  %vm355_vm8 = vcmask 1045509   ;;  %vm357_vm9 = vcmask 1046534   ;;  %vm359_vm10 = vcmask 1047559  }
  0x16   :  { %v87_v12 = vld [vmem:[#allocation3 + $0x58] sm:$0xff]  ;;  %v90_v13 = vld [vmem:[#allocation3 + $0x70] sm:$0xff]  ;;  %v89_v14 = vld [vmem:[#allocation3 + $0x68] sm:$0xff]  ;;  %v1302_v45 = vadd.s32 4294967280, %v1298_v43  ;;  %v1306_v47 = vadd.s32 4294967288, %v1298_v43  ;;  %v1321_v2 = vadd.s32 4294967272, %v1298_v43 }
  0x17   :  { %v93_v15 = vld [vmem:[#allocation3 + $0x88] sm:$0xff]  ;;  %v91_v16 = vld [vmem:[#allocation3 + $0x78] sm:$0xff]  ;;  %v92_v17 = vld [vmem:[#allocation3 + $0x80] sm:$0xff]  ;;  %vm361_vm11 = vcmask 261120   ;;  %vm394_vm12 = vcmask 1041408   ;;  %vm390_vm13 = vcmask 15360  }
  0x18   :  { %v96_v18 = vld [vmem:[#allocation3 + $0xa0] sm:$0xff]  ;;  %v97_v19 = vld [vmem:[#allocation3 + $0xa8] sm:$0xff]  ;;  %v94_v20 = vld [vmem:[#allocation3 + $0x90] sm:$0xff]  ;;  %s1081_s29 = sld [smem:[#allocation9 + $0x4]]  ;;  %s1232_s30 = smov 127  }
  0x19   :  { %v98_v21 = vld [vmem:[#allocation3 + $0xb0] sm:$0xff]  ;;  %v100_v22 = vld [vmem:[#allocation3 + $0xc0] sm:$0xff]  ;;  %v95_v23 = vld [vmem:[#allocation3 + $0x98] sm:$0xff]  ;;  %v1122_v33 = vpop.eup %1121  ;;  %s1233_s9 = smov 1   ;;  %s874_s10 = sld [smem:[#allocation9]] }
  0x1a   :  { %v99_v24 = vld [vmem:[#allocation3 + $0xb8] sm:$0xff]  ;;  %v102_v25 = vld [vmem:[#allocation3 + $0xd0] sm:$0xff]  ;;  %v101_v26 = vld [vmem:[#allocation3 + $0xc8] sm:$0xff]  ;;  %v205_v34 = vmul.f32 128.0, %v1122_v33  ;;  %vm209_vm0 = vweird.f32 %v1122_v33  ;;  %s1079_s11 = sld [smem:[#allocation9 + $0x2]]  ;;  %s1059_s6 = sshll.u32 %s1783_s8, 4  ;;  %s1060_s6 = int_to_ptr.hbm [resolvable:$true] %s1059_s6 }
  0x1b   :  { %150 = vadd.xlane.f32.xlu1 %v81_v3  ;;  %152 = vadd.xlane.f32.xlu2 %v82_v4  ;;  %v105_v27 = vld [vmem:[#allocation3 + $0xe8] sm:$0xff]  ;;  %v103_v28 = vld [vmem:[#allocation3 + $0xd8] sm:$0xff]  ;;  %v104_v29 = vld [vmem:[#allocation3 + $0xe0] sm:$0xff]  ;;  %s1080_s12 = sld [smem:[#allocation9 + $0x3]] }
  0x1c   :  { %142 = vadd.xlane.f32.xlu0 %v77_v5  ;;  %v107_v30 = vld [vmem:[#allocation3 + $0xf8] sm:$0xff]  ;;  %v106_v31 = vld [vmem:[#allocation3 + $0xf0] sm:$0xff]  ;;  %v206_v35 = vsub.f32 1.0, %v205_v34  ;;  %s1082_s15 = sld [smem:[#allocation9 + $0x5]] }
  0x1e   :  { %v207_v36 = vmul.f32 %v1122_v33, %v206_v35 }
  0x20   :  { %v208_v37 = vadd.f32 %v1122_v33, %v207_v36 }
  0x22   :  { %v1295_v42 = vsel %vm209_vm0, %v1122_v33, %v208_v37 }
  0x23   :  { %158 = vadd.xlane.f32.xlu1 %v85_v6  ;;  %146 = vadd.xlane.f32.xlu2 %v79_v7 }
  0x24   :  { %156 = vadd.xlane.f32.xlu0 %v84_v8 }
  0x2b   :  { %160 = vadd.xlane.f32.xlu1 %v86_v9  ;;  %164 = vadd.xlane.f32.xlu2 %v88_v10 }
  0x2c   :  { %154 = vadd.xlane.f32.xlu0 %v83_v11 }
  0x33   :  { %162 = vadd.xlane.f32.xlu1 %v87_v12  ;;  %168 = vadd.xlane.f32.xlu2 %v90_v13 }
  0x34   :  { %166 = vadd.xlane.f32.xlu0 %v89_v14 }
  0x3b   :  { %174 = vadd.xlane.f32.xlu1 %v93_v15  ;;  %170 = vadd.xlane.f32.xlu2 %v91_v16 }
  0x3c   :  { %172 = vadd.xlane.f32.xlu0 %v92_v17 }
  0x43   :  { %180 = vadd.xlane.f32.xlu1 %v96_v18  ;;  %182 = vadd.xlane.f32.xlu2 %v97_v19 }
  0x44   :  { %176 = vadd.xlane.f32.xlu0 %v94_v20 }
  0x4b   :  { %184 = vadd.xlane.f32.xlu1 %v98_v21  ;;  %188 = vadd.xlane.f32.xlu2 %v100_v22 }
  0x4c   :  { %178 = vadd.xlane.f32.xlu0 %v95_v23 }
  0x53   :  { %186 = vadd.xlane.f32.xlu1 %v99_v24  ;;  %192 = vadd.xlane.f32.xlu2 %v102_v25  ;;  %v246_v24 = vld [vmem:[%s1777_s2 + $0x18] sm:$0xff]  ;;  %v245_v25 = vld [vmem:[%s1777_s2 + $0x10] sm:$0xff] }
  0x54   :  { %190 = vadd.xlane.f32.xlu0 %v101_v26  ;;  %376 = vmatpush.msra.mxu0 %v246_v24  ;;  %v244_v26 = vld [vmem:[%s1777_s2 + $0x8] sm:$0xff] }
  0x56   :  { %377 = vmatpush.msra.mxu0 %v245_v25 }
  0x58   :  { %378 = vmatpush.msra.mxu0 %v244_v26 }
  0x5b   :  { %198 = vadd.xlane.f32.xlu1 %v105_v27  ;;  %194 = vadd.xlane.f32.xlu2 %v103_v28  ;;  %v243_v27 = vld [vmem:[%s1777_s2] sm:$0xff] }
  0x5c   :  { %196 = vadd.xlane.f32.xlu0 %v104_v29  ;;  %379 = vmatpush.msra.mxu0 %v243_v27 }
  0x63   :  { %202 = vadd.xlane.f32.xlu1 %v107_v30 }
  0x64   :  { %200 = vadd.xlane.f32.xlu0 %v106_v31 }
  0x86   :  { %v149_v38 = vpop.xlane.xlu1 %148  ;;  %v145_v39 = vpop.xlane.xlu2 %144 }
  0x87   :  { %v141_v41 = vpop.xlane.xlu0 %140  ;;  %v215_v44 = vmul.f32 %v1295_v42, %v149_v38  ;;  %v213_v46 = vmul.f32 %v1295_v42, %v145_v39 }
  0x88   :  { %v211_v48 = vmul.f32 %v1295_v42, %v141_v41 }
  0x89   :  { %v298_v54 = vperm.slane %v215_v44, %v1298_v43  ;;  %v291_v55 = vperm.slane %v213_v46, %v1302_v45 }
  0x8a   :  { %v285_v57 = vperm.slane %v211_v48, %v1298_v43 }
  0x8e   :  { %v151_v49 = vpop.xlane.xlu1 %150  ;;  %v153_v50 = vpop.xlane.xlu2 %152 }
  0x8f   :  { %v216_v51 = vmul.f32 %v1295_v42, %v151_v49  ;;  %v143_v52 = vpop.xlane.xlu0 %142  ;;  %v217_v1 = vmul.f32 %v1295_v42, %v153_v50 }
  0x90   :  { %v212_v53 = vmul.f32 %v1295_v42, %v143_v52 }
  0x91   :  { %v299_v56 = vperm.slane %v216_v51, %v1306_v47  ;;  %v301_v6 = vperm.slane %v217_v1, %v1302_v45 }
  0x92   :  { %v287_v58 = vperm.slane %v212_v53, %v1306_v47 }
  0x93   :  { %v300_v59 = vsel %vm288_vm1, %v299_v56, %v298_v54 }
  0x94   :  { %v289_v60 = vsel %vm288_vm1, %v287_v58, %v285_v57  ;;  %v302_v11 = vsel %vm292_vm2, %v301_v6, %v300_v59 }
  0x95   :  { %v293_v61 = vsel %vm292_vm2, %v291_v55, %v289_v60 }
  0x96   :  { %v159_v62 = vpop.xlane.xlu1 %158  ;;  %v147_v63 = vpop.xlane.xlu2 %146 }
  0x97   :  { %v157_v0 = vpop.xlane.xlu0 %156  ;;  %v214_v3 = vmul.f32 %v1295_v42, %v147_v63  ;;  %v220_v31 = vmul.f32 %v1295_v42, %v159_v62 }
  0x98   :  { %v219_v32 = vmul.f32 %v1295_v42, %v157_v0 }
  0x99   :  { %v295_v8 = vperm.slane %v214_v3, %v1321_v2  ;;  %v306_v38 = vperm.slane %v220_v31, %v1306_v47 }
  0x9a   :  { %v305_v39 = vperm.slane %v219_v32, %v1298_v43 }
  0x9b   :  { %v297_v12 = vsel %vm296_vm3, %v295_v8, %v293_v61 }
  0x9c   :  { %v307_v52 = vsel %vm288_vm1, %v306_v38, %v305_v39 }
  0x9e   :  { %v161_v4 = vpop.xlane.xlu1 %160  ;;  %v165_v5 = vpop.xlane.xlu2 %164 }
  0x9f   :  { %v155_v7 = vpop.xlane.xlu0 %154  ;;  %v223_v35 = vmul.f32 %v1295_v42, %v165_v5  ;;  %v221_v41 = vmul.f32 %v1295_v42, %v161_v4 }
  0xa0   :  { %v218_v9 = vmul.f32 %v1295_v42, %v155_v7 }
  0xa1   :  { %v312_v44 = vperm.slane %v223_v35, %v1298_v43  ;;  %v308_v55 = vperm.slane %v221_v41, %v1302_v45 }
  0xa2   :  { %v303_v10 = vperm.slane %v218_v9, %v1321_v2 }
  0xa4   :  { %v304_v13 = vsel %vm296_vm3, %v303_v10, %v302_v11 }
  0xa5   :  { %v1332_v14 = vsel %vm347_vm4, %v304_v13, %v297_v12 }
  0xa6   :  { %v163_v15 = vpop.xlane.xlu1 %162  ;;  %v169_v16 = vpop.xlane.xlu2 %168 }
  0xa7   :  { %v167_v17 = vpop.xlane.xlu0 %166  ;;  %v222_v46 = vmul.f32 %v1295_v42, %v163_v15  ;;  %v225_v48 = vmul.f32 %v1295_v42, %v169_v16  ;;  %v309_v16 = vsel %vm292_vm2, %v308_v55, %v307_v52  ;;  %v1119_v55 = vld [vmem:[%s1778_s3] ss:$0 sm:$0xff] }
  0xa8   :  { %v224_v36 = vmul.f32 %v1295_v42, %v167_v17 }
  0xa9   :  { %v310_v60 = vperm.slane %v222_v46, %v1321_v2  ;;  %v315_v61 = vperm.slane %v225_v48, %v1302_v45 }
  0xaa   :  { %v313_v49 = vperm.slane %v224_v36, %v1306_v47 }
  0xac   :  { %v314_v62 = vsel %vm288_vm1, %v313_v49, %v312_v44 }
  0xae   :  { %v175_v18 = vpop.xlane.xlu1 %174  ;;  %v171_v19 = vpop.xlane.xlu2 %170 }
  0xaf   :  { %v173_v20 = vpop.xlane.xlu0 %172  ;;  %v228_v50 = vmul.f32 %v1295_v42, %v175_v18  ;;  %v226_v51 = vmul.f32 %v1295_v42, %v171_v19 }
  0xb0   :  { %v227_v53 = vmul.f32 %v1295_v42, %v173_v20  ;;  %v316_v20 = vsel %vm292_vm2, %v315_v61, %v314_v62  ;;  %v1120_v62 = vld [vmem:[%s1780_s5] ss:$0 sm:$0xff]  ;;  %s1078_s5 = sld [smem:[#allocation9 + $0x1]] }
  0xb1   :  { %v320_v3 = vperm.slane %v228_v50, %v1306_v47  ;;  %v317_v4 = vperm.slane %v226_v51, %v1321_v2 }
  0xb2   :  { %v319_v7 = vperm.slane %v227_v53, %v1298_v43 }
  0xb3   :  { %v318_v24 = vsel %vm296_vm3, %v317_v4, %v316_v20 }
  0xb4   :  { %v321_v27 = vsel %vm288_vm1, %v320_v3, %v319_v7 }
  0xb6   :  { %v181_v21 = vpop.xlane.xlu1 %180  ;;  %v183_v22 = vpop.xlane.xlu2 %182 }
  0xb7   :  { %v177_v23 = vpop.xlane.xlu0 %176  ;;  %v231_v54 = vmul.f32 %v1295_v42, %v181_v21  ;;  %v232_v56 = vmul.f32 %v1295_v42, %v183_v22 }
  0xb8   :  { %v229_v63 = vmul.f32 %v1295_v42, %v177_v23  ;;  %v311_v23 = vsel %vm296_vm3, %v310_v60, %v309_v16 }
  0xb9   :  { %v326_v8 = vperm.slane %v231_v54, %v1298_v43  ;;  %v327_v11 = vperm.slane %v232_v56, %v1306_v47 }
  0xba   :  { %v322_v17 = vperm.slane %v229_v63, %v1302_v45 }
  0xbc   :  { %v323_v32 = vsel %vm292_vm2, %v322_v17, %v321_v27  ;;  %v108_v27 = vld [vmem:[#allocation7] sm:$0xff] }
  0xbe   :  { %v185_v28 = vpop.xlane.xlu1 %184  ;;  %v189_v29 = vpop.xlane.xlu2 %188 }
  0xbf   :  { %v179_v30 = vpop.xlane.xlu0 %178  ;;  %v235_v57 = vmul.f32 %v1295_v42, %v189_v29  ;;  %v233_v5 = vmul.f32 %v1295_v42, %v185_v28  ;;  %v328_v28 = vsel %vm288_vm1, %v327_v11, %v326_v8 }
  0xc0   :  { %v230_v6 = vmul.f32 %v1295_v42, %v179_v30 }
  0xc1   :  { %v333_v12 = vperm.slane %v235_v57, %v1298_v43  ;;  %v329_v21 = vperm.slane %v233_v5, %v1302_v45 }
  0xc2   :  { %v324_v22 = vperm.slane %v230_v6, %v1321_v2 }
  0xc3   :  { %v330_v38 = vsel %vm292_vm2, %v329_v21, %v328_v28 }
  0xc4   :  { %v325_v39 = vsel %vm296_vm3, %v324_v22, %v323_v32 }
  0xc6   :  { %v187_v33 = vpop.xlane.xlu1 %186  ;;  %v193_v34 = vpop.xlane.xlu2 %192 }
  0xc7   :  { %v191_v37 = vpop.xlane.xlu0 %190  ;;  %v234_v9 = vmul.f32 %v1295_v42, %v187_v33  ;;  %v237_v10 = vmul.f32 %v1295_v42, %v193_v34 }
  0xc8   :  { %v236_v58 = vmul.f32 %v1295_v42, %v191_v37  ;;  %v350_v37 = vsel %vm349_vm5, %v311_v23, %v1332_v14 }
  0xc9   :  { %v331_v25 = vperm.slane %v234_v9, %v1321_v2  ;;  %v336_v26 = vperm.slane %v237_v10, %v1302_v45  ;;  %v352_v48 = vsel %vm351_vm6, %v318_v24, %v350_v37 }
  0xca   :  { %v334_v13 = vperm.slane %v236_v58, %v1306_v47  ;;  %v354_v51 = vsel %vm353_vm7, %v325_v39, %v352_v48 }
  0xcb   :  { %v332_v44 = vsel %vm296_vm3, %v331_v25, %v330_v38  ;;  %v109_v25 = vld [vmem:[#allocation7 + $0x8] sm:$0xff] }
  0xcc   :  { %v335_v29 = vsel %vm288_vm1, %v334_v13, %v333_v12  ;;  %v356_v52 = vsel %vm355_vm8, %v332_v44, %v354_v51  ;;  %v1231_v44 = vmov 32.0  }
  0xce   :  { %v199_v59 = vpop.xlane.xlu1 %198  ;;  %v195_v0 = vpop.xlane.xlu2 %194 }
  0xcf   :  { %v197_v1 = vpop.xlane.xlu0 %196  ;;  %v238_v15 = vmul.f32 %v1295_v42, %v195_v0  ;;  %v240_v18 = vmul.f32 %v1295_v42, %v199_v59  ;;  %v1426_v59 = vshrl.u32 %v283_v40, 7 }
  0xd0   :  { %v239_v19 = vmul.f32 %v1295_v42, %v197_v1 }
  0xd1   :  { %v338_v30 = vperm.slane %v238_v15, %v1321_v2  ;;  %v341_v33 = vperm.slane %v240_v18, %v1306_v47  ;;  %v337_v47 = vsel %vm292_vm2, %v336_v26, %v335_v29  ;;  %1094 = vset.pattern.permute.xlu2 %v1426_v59  ;;  %v1430_v60 = vadd.s32 16, %v1426_v59 }
  0xd2   :  { %v340_v34 = vperm.slane %v239_v19, %v1298_v43  ;;  %v1433_v61 = vadd.s32 8, %v1426_v59  ;;  %v1441_v16 = vadd.s32 24, %v1426_v59 }
  0xd3   :  { %v339_v50 = vsel %vm296_vm3, %v338_v30, %v337_v47  ;;  %1096 = vset.pattern.permute.xlu1 %v1430_v60 }
  0xd4   :  { %v342_v14 = vsel %vm288_vm1, %v341_v33, %v340_v34  ;;  %v358_v53 = vsel %vm357_vm9, %v339_v50, %v356_v52  ;;  %1095 = vset.pattern.permute.xlu0 %v1433_v61  ;;  %v114_v52 = vld [vmem:[#allocation7 + $0x30] sm:$0xff] }
  0xd6   :  { %v203_v31 = vpop.xlane.xlu1 %202 }
  0xd7   :  { %v201_v35 = vpop.xlane.xlu0 %200  ;;  %v242_v36 = vmul.f32 %v1295_v42, %v203_v31  ;;  %v110_v31 = vld [vmem:[#allocation7 + $0x10] sm:$0xff] }
  0xd8   :  { %v241_v41 = vmul.f32 %v1295_v42, %v201_v35 }
  0xd9   :  { %v345_v46 = vperm.slane %v242_v36, %v1321_v2  ;;  %v111_v36 = vld [vmem:[#allocation7 + $0x18] sm:$0xff] }
  0xda   :  { %v343_v49 = vperm.slane %v241_v41, %v1302_v45  ;;  %v385_v45 = vld [vmem:[%s1779_s4] sm:$0x3] }
  0xdb   :  { %1075 = vmatpush.msk.msra.mxu1 %vm394_vm12, %v385_v45 }
  0xdc   :  { %v344_v42 = vsel %vm292_vm2, %v343_v49, %v342_v14  ;;  %v113_v49 = vld [vmem:[#allocation7 + $0x28] sm:$0xff] }
  0xdd   :  { %v346_v2 = vsel %vm296_vm3, %v345_v46, %v344_v42  ;;  %v112_v42 = vld [vmem:[#allocation7 + $0x20] sm:$0xff]  ;;  %vm828_vm3 = vcmp.eq.s32.totalorder %v1298_v43, 0 }
  0xde   :  { %v360_v54 = vsel %vm359_vm10, %v346_v2, %v358_v53 }
  0xdf   :  { %1074 = vmatmul.msk.f32.vlgmr.msra.gmra.mxu0 %vm361_vm11, %v360_v54 }
 0x15c   :  { %v381_v56 = vpop.f32.mrf.mxu0 }
 0x15d   :  { %v382_v57 = vadd.f32 %v1119_v55, %v381_v56 }
 0x15f   :  { %v384_v58 = vmax.f32 %v382_v57, 0.0 }
 0x161   :  { %1076 = vmatmul.msk.f32.vlgmr.msra.gmra.mxu1 %vm390_vm13, %v384_v58  ;;  %v115_v58 = vld [vmem:[#allocation7 + $0x38] sm:$0xff] }
 0x1de   :  { %v415_v63 = vpop.f32.mrf.mxu1 }
 0x1df   :  { %v416_v0 = vadd.f32 %v1120_v62, %v415_v63 }
 0x1e1   :  { %v1077_v40 = vmul.f32 -1.442695, %v416_v0 }
 0x1e3   :  { %1123 = vpow2.f32 %v1077_v40 }
 0x1e9   :  { %v1124_v1 = vpop.eup %1123 }
 0x1ea   :  { %v421_v3 = vadd.f32 1.0, %v1124_v1 }
 0x1ec   :  { %1125 = vrcp.f32 %v421_v3  ;;  %v433_v7 = vand.u32 2147483648, %v421_v3  ;;  %v431_v9 = vand.u32 2147483647, %v421_v3  ;;  %vm427_vm15 = vweird.f32 %v421_v3 }
 0x1ed   :  { %1127 = vrcp.f32 %v1231_v44 }
 0x1ee   :  { %v434_v11 = vor.u32 1.1754944e-38, %v433_v7  ;;  %vm432_vm1 = vcmp.eq.f32.partialorder %v431_v9, 8.507059e+37 }
 0x1f2   :  { %v1126_v4 = vpop.eup %1125 }
 0x1f3   :  { %v423_v5 = vmul.f32 %v1126_v4, %v421_v3  ;;  %vm428_vm14 = vweird.f32 %v1126_v4  ;;  %v1128_v14 = vpop.eup %1127 }
 0x1f4   :  { %vm429_vm0 = vmor %vm427_vm15, %vm428_vm14  ;;  %v814_v45 = vmul.f32 32.0, %v1128_v14  ;;  %vm818_vm2 = vweird.f32 %v1128_v14 }
 0x1f5   :  { %v424_v6 = vsub.f32 1.0, %v423_v5 }
 0x1f6   :  { %v815_v63 = vsub.f32 1.0, %v814_v45  ;;  %v118_v45 = vld [vmem:[#allocation7 + $0x50] sm:$0xff] }
 0x1f7   :  { %v425_v8 = vmul.f32 %v1126_v4, %v424_v6 }
 0x1f9   :  { %v426_v10 = vadd.f32 %v1126_v4, %v425_v8  ;;  %v816_v8 = vmul.f32 %v1128_v14, %v815_v63 }
 0x1fb   :  { %v430_v12 = vsel %vm429_vm0, %v1126_v4, %v426_v10 }
 0x1fc   :  { %v435_v13 = vsel %vm432_vm1, %v434_v11, %v430_v12 }
 0x1fd   :  { %v437_v15 = vperm.slane %v435_v13, 0  ;;  %v462_v17 = vperm.slane %v435_v13, 1  ;;  %v487_v18 = vperm.slane %v435_v13, 2  ;;  %v1446_v19 = vperm.slane %v435_v13, 4 }
 0x1fe   :  { %v1451_v20 = vperm.slane %v435_v13, 5  ;;  %v512_v21 = vperm.slane %v435_v13, 3  ;;  %v1461_v22 = vperm.slane %v435_v13, 7  ;;  %v1472_v23 = vperm.slane %v435_v13, 6 }
 0x1ff   :  { %454 = vperm.xlu1 %1096, %v437_v15   ;;  %448 = vperm.xlu0 %1095, %v437_v15  }
 0x200   :  { %442 = vperm.xlu2 %1094, %v437_v15  }
 0x207   :  { %1099 = vset.pattern.permute.xlu1 %v1433_v61  ;;  %1102 = vset.pattern.permute.xlu0 %v1426_v59 }
 0x208   :  { %1097 = vset.pattern.permute.xlu2 %v1441_v16 }
 0x20f   :  { %473 = vperm.xlu1 %1099, %v462_v17   ;;  %492 = vperm.xlu0 %1102, %v487_v18  }
 0x210   :  { %460 = vperm.xlu2 %1097, %v437_v15   ;;  %v817_v15 = vadd.f32 %v1128_v14, %v816_v8 }
 0x217   :  { %1101 = vset.pattern.permute.xlu1 %v1441_v16  ;;  %542 = vperm.xlu0 %1102, %v1446_v19  }
 0x218   :  { %1098 = vset.pattern.permute.xlu2 %v1426_v59 }
 0x21f   :  { %485 = vperm.xlu1 %1101, %v462_v17   ;;  %567 = vperm.xlu0 %1102, %v1451_v20  }
 0x220   :  { %467 = vperm.xlu2 %1098, %v462_v17  }
 0x227   :  { %1104 = vset.pattern.permute.xlu1 %v1426_v59  ;;  %1107 = vset.pattern.permute.xlu0 %v1430_v60 }
 0x228   :  { %1100 = vset.pattern.permute.xlu2 %v1430_v60 }
 0x22f   :  { %517 = vperm.xlu1 %1104, %v512_v21   ;;  %554 = vperm.xlu0 %1107, %v1446_v19  }
 0x230   :  { %479 = vperm.xlu2 %1100, %v462_v17  }
 0x237   :  { %1105 = vset.pattern.permute.xlu1 %v1430_v60  ;;  %1112 = vset.pattern.permute.xlu0 %v1426_v59 }
 0x238   :  { %1103 = vset.pattern.permute.xlu2 %v1433_v61 }
 0x23f   :  { %504 = vperm.xlu1 %1105, %v487_v18   ;;  %617 = vperm.xlu0 %1112, %v1461_v22  }
 0x240   :  { %498 = vperm.xlu2 %1103, %v487_v18  }
 0x247   :  { %529 = vperm.xlu1 %1105, %v512_v21   ;;  %1116 = vset.pattern.permute.xlu0 %v1430_v60 }
 0x248   :  { %523 = vperm.xlu2 %1103, %v512_v21  }
 0x24f   :  { %1106 = vset.pattern.permute.xlu1 %v1441_v16  ;;  %629 = vperm.xlu0 %1116, %v1461_v22  }
 0x250   :  { %548 = vperm.xlu2 %1103, %v1446_v19  }
 0x257   :  { %510 = vperm.xlu1 %1106, %v487_v18   ;;  %1118 = vset.pattern.permute.xlu0 %v1441_v16 }
 0x258   :  { %573 = vperm.xlu2 %1103, %v1451_v20  }
 0x25a   :  { %v443_v24 = vpop.permute.xlu2 %442 }
 0x25b   :  { %v1481_v29 = vmul.f32 %v443_v24, %v108_v27 }
 0x25f   :  { %1109 = vset.pattern.permute.xlu1 %v1433_v61 }
 0x260   :  { %1108 = vset.pattern.permute.xlu2 %v1426_v59 }
 0x267   :  { %598 = vperm.xlu1 %1109, %v1472_v23  }
 0x268   :  { %592 = vperm.xlu2 %1108, %v1472_v23  }
 0x26a   :  { %v461_v30 = vpop.permute.xlu2 %460 }
 0x26b   :  { %v1492_v38 = vmul.f32 %v461_v30, %v111_v36  ;;  %v1523_v30 = vstv %s1078_s5 }
 0x26f   :  { %1111 = vset.pattern.permute.xlu1 %v1430_v60 }
 0x270   :  { %1110 = vset.pattern.permute.xlu2 %v1441_v16 }
 0x271   :  { %v449_v26 = vpop.permute.xlu0 %448  ;;  %v455_v32 = vpop.permute.xlu1 %454 }
 0x272   :  { %v1479_v28 = vmul.f32 %v449_v26, %v109_v25  ;;  %v1485_v34 = vmul.f32 %v455_v32, %v110_v31  ;;  %v1519_v25 = vsel %vm818_vm2, %v1128_v14, %v817_v15 }
 0x274   :  { %v741_v33 = vadd.f32 %v1479_v28, %v1481_v29  ;;  %v669_v35 = vmax.f32 %v1481_v29, %v1479_v28 }
 0x276   :  { %v742_v37 = vadd.f32 %v741_v33, %v1485_v34  ;;  %v670_v39 = vmax.f32 %v669_v35, %v1485_v34  ;;  %v1531_v35 = vstv %s1081_s29 }
 0x277   :  { %579 = vperm.xlu1 %1111, %v1451_v20  }
 0x278   :  { %535 = vperm.xlu2 %1110, %v512_v21   ;;  %v743_v46 = vadd.f32 %v742_v37, %v1492_v38  ;;  %v671_v47 = vmax.f32 %v670_v39, %v1492_v38 }
 0x27a   :  { %v468_v41 = vpop.permute.xlu2 %467  ;;  %v744_v48 = vrot.slane %v743_v46, 4  ;;  %v672_v51 = vrot.slane %v671_v47, 4 }
 0x27b   :  { %v1501_v56 = vmul.f32 %v468_v41, %v112_v42 }
 0x27c   :  { %v745_v53 = vadd.f32 %v744_v48, %v743_v46  ;;  %v673_v55 = vmax.f32 %v671_v47, %v672_v51  ;;  %v117_v51 = vld [vmem:[#allocation7 + $0x48] sm:$0xff] }
 0x27e   :  { %v746_v59 = vrot.slane %v745_v53, 2  ;;  %v674_v40 = vrot.slane %v673_v55, 2 }
 0x27f   :  { %1114 = vset.pattern.permute.xlu1 %v1441_v16 }
 0x280   :  { %1113 = vset.pattern.permute.xlu2 %v1433_v61  ;;  %v747_v5 = vadd.f32 %v746_v59, %v745_v53  ;;  %v675_v9 = vmax.f32 %v673_v55, %v674_v40  ;;  %v121_v40 = vld [vmem:[#allocation7 + $0x68] sm:$0xff] }
 0x281   :  { %v474_v50 = vpop.permute.xlu1 %473  ;;  %v493_v53 = vpop.permute.xlu0 %492 }
 0x282   :  { %v1499_v54 = vmul.f32 %v474_v50, %v113_v49  ;;  %v676_v17 = vrot.slane %v675_v9, 1 }
 0x284   :  { %v678_v61 = vmax.f32 %v1501_v56, %v1499_v54  ;;  %v750_v62 = vadd.f32 %v1499_v54, %v1501_v56  ;;  %v1521_v26 = vmax.f32 %v675_v9, %v676_v17 }
 0x286   :  { %v879_v36 = vmul.f32 %v1523_v30, %v1521_v26 }
 0x287   :  { %560 = vperm.xlu1 %1114, %v1446_v19  }
 0x288   :  { %623 = vperm.xlu2 %1113, %v1461_v22  }
 0x28a   :  { %v480_v2 = vpop.permute.xlu2 %479 }
 0x28b   :  { %v1503_v57 = vmul.f32 %v480_v2, %v114_v52  ;;  %v116_v2 = vld [vmem:[#allocation7 + $0x40] sm:$0xff] }
 0x28d   :  { %v679_v1 = vmax.f32 %v678_v61, %v1503_v57  ;;  %v751_v3 = vadd.f32 %v750_v62, %v1503_v57  ;;  %v119_v61 = vld [vmem:[#allocation7 + $0x58] sm:$0xff] }
 0x28f   :  { %585 = vperm.xlu1 %1114, %v1451_v20  }
 0x290   :  { %1115 = vset.pattern.permute.xlu2 %v1430_v60  ;;  %v748_v60 = vrot.slane %v747_v5, 1 }
 0x291   :  { %v486_v0 = vpop.permute.xlu1 %485 }
 0x292   :  { %v1513_v4 = vmul.f32 %v486_v0, %v115_v58  ;;  %v749_v20 = vadd.f32 %v748_v60, %v747_v5  ;;  %v1557_v58 = vmul.f32 %v493_v53, %v116_v2  ;;  %v120_v0 = vld [vmem:[#allocation7 + $0x60] sm:$0xff] }
 0x294   :  { %v680_v6 = vmax.f32 %v679_v1, %v1513_v4  ;;  %v752_v7 = vadd.f32 %v751_v3, %v1513_v4  ;;  %v1526_v31 = vmul.f32 %v1519_v25, %v749_v20 }
 0x296   :  { %v681_v10 = vrot.slane %v680_v6, 4  ;;  %v753_v11 = vrot.slane %v752_v7, 4  ;;  %v914_v41 = vmul.f32 %v1531_v35, %v1526_v31 }
 0x297   :  { %635 = vperm.xlu1 %1114, %v1461_v22  }
 0x298   :  { %v682_v12 = vmax.f32 %v680_v6, %v681_v10  ;;  %v754_v13 = vadd.f32 %v753_v11, %v752_v7  ;;  %604 = vperm.xlu2 %1115, %v1472_v23   ;;  %v122_v7 = vld [vmem:[#allocation7 + $0x70] sm:$0xff] }
 0x29a   :  { %v683_v18 = vrot.slane %v682_v12, 2  ;;  %v755_v19 = vrot.slane %v754_v13, 2  ;;  %v499_v46 = vpop.permute.xlu2 %498 }
 0x29b   :  { %v1555_v55 = vmul.f32 %v499_v46, %v117_v51 }
 0x29c   :  { %v684_v21 = vmax.f32 %v682_v12, %v683_v18  ;;  %v756_v24 = vadd.f32 %v755_v19, %v754_v13  ;;  %v123_v18 = vld [vmem:[#allocation7 + $0x78] sm:$0xff] }
 0x29d   :  { %v759_v62 = vadd.f32 %v1555_v55, %v1557_v58 }
 0x29e   :  { %v685_v27 = vrot.slane %v684_v21, 1  ;;  %v757_v22 = vrot.slane %v756_v24, 1 }
 0x2a0   :  { %v1528_v32 = vmax.f32 %v684_v21, %v685_v27  ;;  %v758_v33 = vadd.f32 %v757_v22, %v756_v24  ;;  %1117 = vset.pattern.permute.xlu2 %v1441_v16 }
 0x2a1   :  { %v518_v49 = vpop.permute.xlu1 %517 }
 0x2a2   :  { %v1536_v37 = vmul.f32 %v1519_v25, %v758_v33  ;;  %v880_v39 = vmul.f32 %v1523_v30, %v1528_v32  ;;  %v524_v48 = vpop.permute.xlu2 %523  ;;  %v1573_v10 = vmul.f32 %v518_v49, %v120_v0 }
 0x2a3   :  { %v1575_v11 = vmul.f32 %v524_v48, %v121_v40 }
 0x2a4   :  { %v1543_v44 = vsel %vm347_vm4, %v880_v39, %v879_v36  ;;  %v915_v16 = vmul.f32 %v1531_v35, %v1536_v37 }
 0x2a5   :  { %v696_v19 = vmax.f32 %v1573_v10, %v1575_v11  ;;  %v768_v20 = vadd.f32 %v1575_v11, %v1573_v10 }
 0x2a6   :  { %v1548_v47 = vsel %vm347_vm4, %v915_v16, %v914_v41 }
 0x2a8   :  { %610 = vperm.xlu2 %1117, %v1472_v23   ;;  %v687_v23 = vmax.f32 %v1557_v58, %v1555_v55 }
 0x2aa   :  { %v1551_v14 = vpop.permute.xlu2 %548 }
 0x2b1   :  { %v505_v50 = vpop.permute.xlu1 %504 }
 0x2b2   :  { %v1553_v52 = vpop.permute.xlu2 %573  ;;  %v1559_v59 = vmul.f32 %v505_v50, %v118_v45 }
 0x2b4   :  { %v688_v1 = vmax.f32 %v687_v23, %v1559_v59  ;;  %v760_v3 = vadd.f32 %v759_v62, %v1559_v59 }
 0x2b9   :  { %v530_v42 = vpop.permute.xlu1 %529 }
 0x2ba   :  { %v1577_v13 = vmul.f32 %v530_v42, %v122_v7 }
 0x2bc   :  { %v697_v22 = vmax.f32 %v696_v19, %v1577_v13  ;;  %v769_v33 = vadd.f32 %v768_v20, %v1577_v13 }
 0x2c2   :  { %v1567_v5 = vpop.permute.xlu2 %592 }
 0x2c9   :  { %v511_v63 = vpop.permute.xlu1 %510 }
 0x2ca   :  { %v1569_v6 = vmul.f32 %v511_v63, %v119_v61 }
 0x2cc   :  { %v689_v8 = vmax.f32 %v688_v1, %v1569_v6  ;;  %v761_v9 = vadd.f32 %v760_v3, %v1569_v6 }
 0x2ce   :  { %v690_v60 = vrot.slane %v689_v8, 4  ;;  %v762_v12 = vrot.slane %v761_v9, 4 }
 0x2d0   :  { %v691_v15 = vmax.f32 %v689_v8, %v690_v60  ;;  %v763_v17 = vadd.f32 %v762_v12, %v761_v9 }
 0x2d2   :  { %v692_v21 = vrot.slane %v691_v15, 2  ;;  %v764_v24 = vrot.slane %v763_v17, 2  ;;  %v536_v27 = vpop.permute.xlu2 %535 }
 0x2d3   :  { %v1585_v36 = vmul.f32 %v536_v27, %v123_v18  ;;  %v124_v27 = vld [vmem:[#allocation7 + $0x80] sm:$0xff] }
 0x2d4   :  { %v693_v39 = vmax.f32 %v691_v15, %v692_v21  ;;  %v765_v41 = vadd.f32 %v764_v24, %v763_v17  ;;  %v543_v15 = vpop.permute.xlu0 %542  ;;  %v125_v24 = vld [vmem:[#allocation7 + $0x88] sm:$0xff] }
 0x2d5   :  { %v698_v16 = vmax.f32 %v697_v22, %v1585_v36  ;;  %v770_v46 = vadd.f32 %v769_v33, %v1585_v36  ;;  %v1618_v33 = vmul.f32 %v1551_v14, %v125_v24  ;;  %v130_v14 = vld [vmem:[#allocation7 + $0xb0] sm:$0xff]  ;;  %v137_v24 = vld [vmem:[#allocation7 + $0xe8] sm:$0xff] }
 0x2d6   :  { %v694_v48 = vrot.slane %v693_v39, 1  ;;  %v766_v49 = vrot.slane %v765_v41, 1 }
 0x2d7   :  { %v699_v50 = vrot.slane %v698_v16, 4  ;;  %v771_v51 = vrot.slane %v770_v46, 4 }
 0x2d8   :  { %v1589_v42 = vmax.f32 %v693_v39, %v694_v48  ;;  %v767_v2 = vadd.f32 %v766_v49, %v765_v41  ;;  %v1620_v41 = vmul.f32 %v543_v15, %v124_v27 }
 0x2d9   :  { %v700_v53 = vmax.f32 %v698_v16, %v699_v50  ;;  %v772_v45 = vadd.f32 %v771_v51, %v770_v46  ;;  %v599_v20 = vpop.permute.xlu1 %598  ;;  %v126_v46 = vld [vmem:[#allocation7 + $0x90] sm:$0xff]  ;;  %v127_v50 = vld [vmem:[#allocation7 + $0x98] sm:$0xff] }
 0x2da   :  { %v1592_v61 = vmul.f32 %v1519_v25, %v767_v2  ;;  %v881_v23 = vmul.f32 %v1523_v30, %v1589_v42  ;;  %v705_v48 = vmax.f32 %v1620_v41, %v1618_v33  ;;  %v777_v49 = vadd.f32 %v1618_v33, %v1620_v41  ;;  %v129_v2 = vld [vmem:[#allocation7 + $0xa8] sm:$0xff] }
 0x2db   :  { %v701_v62 = vrot.slane %v700_v53, 2  ;;  %v773_v63 = vrot.slane %v772_v45, 2 }
 0x2dc   :  { %v916_v0 = vmul.f32 %v1531_v35, %v1592_v61  ;;  %v896_v3 = vsel %vm349_vm5, %v881_v23, %v1543_v44  ;;  %v568_v21 = vpop.permute.xlu0 %567  ;;  %v133_v23 = vld [vmem:[#allocation7 + $0xc8] sm:$0xff] }
 0x2dd   :  { %v702_v40 = vmax.f32 %v700_v53, %v701_v62  ;;  %v774_v1 = vadd.f32 %v773_v63, %v772_v45  ;;  %v128_v45 = vld [vmem:[#allocation7 + $0xa0] sm:$0xff] }
 0x2de   :  { %v931_v7 = vsel %vm349_vm5, %v916_v0, %v1548_v47  ;;  %v1637_v15 = vmul.f32 %v568_v21, %v128_v45 }
 0x2df   :  { %v703_v8 = vrot.slane %v702_v40, 1  ;;  %v775_v9 = vrot.slane %v774_v1, 1 }
 0x2e0   :  { %1797 = vst [vmem:[#allocation17_spill] sm:$0xff] %v1637_v15 }
 0x2e1   :  { %v1602_v60 = vmax.f32 %v702_v40, %v703_v8  ;;  %v776_v12 = vadd.f32 %v775_v9, %v774_v1  ;;  %v1633_v1 = vmul.f32 %v1553_v52, %v129_v2  ;;  %v134_v8 = vld [vmem:[#allocation7 + $0xd0] sm:$0xff] }
 0x2e2   :  { %v624_v39 = vpop.permute.xlu2 %623 }
 0x2e3   :  { %v1605_v17 = vmul.f32 %v1519_v25, %v776_v12  ;;  %v882_v18 = vmul.f32 %v1523_v30, %v1602_v60  ;;  %1796 = vst [vmem:[#allocation16_spill] sm:$0xff] %v1633_v1  ;;  %v714_v52 = vmax.f32 %v1637_v15, %v1633_v1  ;;  %v786_v21 = vadd.f32 %v1633_v1, %v1637_v15 }
 0x2e4   :  { %v555_v16 = vpop.permute.xlu0 %554 }
 0x2e5   :  { %v917_v19 = vmul.f32 %v1531_v35, %v1605_v17  ;;  %v1612_v44 = vsel %vm351_vm6, %v882_v18, %v896_v3  ;;  %v1626_v51 = vmul.f32 %v555_v16, %v126_v46  ;;  %v1639_v18 = vmul.f32 %v599_v20, %v133_v23 }
 0x2e6   :  { %v1656_v23 = vmul.f32 %v624_v39, %v137_v24  ;;  %v138_v39 = vld [vmem:[#allocation7 + $0xf0] sm:$0xff] }
 0x2e7   :  { %v1615_v47 = vsel %vm351_vm6, %v917_v19, %v931_v7  ;;  %v706_v0 = vmax.f32 %v705_v48, %v1626_v51  ;;  %v778_v40 = vadd.f32 %v777_v49, %v1626_v51  ;;  %v132_v7 = vld [vmem:[#allocation7 + $0xc0] sm:$0xff]  ;;  %1798 = vst [vmem:[#allocation18_spill] sm:$0xff] %v1639_v18  ;;  %v131_v49 = vld [vmem:[#allocation7 + $0xb8] sm:$0xff] }
 0x2e8   :  { %v1646_v46 = vmul.f32 %v1567_v5, %v132_v7  ;;  %1802 = vst [vmem:[#allocation22_spill] sm:$0xff] %v1656_v23 }
 0x2e9   :  { %v580_v22 = vpop.permute.xlu1 %579 }
 0x2ea   :  { %v1641_v19 = vmul.f32 %v580_v22, %v130_v14  ;;  %1800 = vst [vmem:[#allocation20_spill] sm:$0xff] %v1646_v46  ;;  %v135_v22 = vld [vmem:[#allocation7 + $0xd8] sm:$0xff]  ;;  %v795_v45 = vadd.f32 %v1639_v18, %v1646_v46 }
 0x2ec   :  { %v618_v3 = vpop.permute.xlu0 %617  ;;  %1799 = vst [vmem:[#allocation19_spill] sm:$0xff] %v1641_v19  ;;  %v715_v5 = vmax.f32 %v714_v52, %v1641_v19 }
 0x2f2   :  { %v605_v62 = vpop.permute.xlu2 %604 }
 0x2f3   :  { %v1648_v48 = vmul.f32 %v605_v62, %v134_v8  ;;  %v787_v62 = vadd.f32 %v786_v21, %v1641_v19 }
 0x2f4   :  { %v630_v24 = vpop.permute.xlu0 %629 }
 0x2f5   :  { %1801 = vst [vmem:[#allocation21_spill] sm:$0xff] %v1648_v48 }
 0x2f9   :  { %v561_v53 = vpop.permute.xlu1 %560 }
 0x2fa   :  { %v1628_v63 = vmul.f32 %v561_v53, %v127_v50  ;;  %v136_v50 = vld [vmem:[#allocation7 + $0xe0] sm:$0xff]  ;;  %v723_v53 = vmax.f32 %v1646_v46, %v1639_v18 }
 0x2fc   :  { %1795 = vst [vmem:[#allocation15_spill] sm:$0xff] %v1628_v63  ;;  %v707_v9 = vmax.f32 %v706_v0, %v1628_v63  ;;  %v779_v12 = vadd.f32 %v778_v40, %v1628_v63 }
 0x2fe   :  { %v708_v27 = vrot.slane %v707_v9, 4  ;;  %v780_v16 = vrot.slane %v779_v12, 4 }
 0x300   :  { %v709_v20 = vmax.f32 %v707_v9, %v708_v27  ;;  %v781_v2 = vadd.f32 %v780_v16, %v779_v12  ;;  %v1662_v9 = vmul.f32 %v618_v3, %v136_v50  ;;  %v724_v12 = vmax.f32 %v723_v53, %v1648_v48 }
 0x301   :  { %v586_v14 = vpop.permute.xlu1 %585  ;;  %v796_v27 = vadd.f32 %v795_v45, %v1648_v48 }
 0x302   :  { %v710_v0 = vrot.slane %v709_v20, 2  ;;  %v782_v40 = vrot.slane %v781_v2, 2  ;;  %v1660_v7 = vmul.f32 %v586_v14, %v131_v49  ;;  %v611_v8 = vpop.permute.xlu2 %610  ;;  %1804 = vst [vmem:[#allocation24_spill] sm:$0xff] %v1662_v9  ;;  %v732_v49 = vmax.f32 %v1662_v9, %v1656_v23 }
 0x303   :  { %v1666_v16 = vmul.f32 %v611_v8, %v135_v22  ;;  %v804_v3 = vadd.f32 %v1656_v23, %v1662_v9 }
 0x304   :  { %1803 = vst [vmem:[#allocation23_spill] sm:$0xff] %v1660_v7  ;;  %v711_v18 = vmax.f32 %v709_v20, %v710_v0  ;;  %v783_v52 = vadd.f32 %v782_v40, %v781_v2  ;;  %v716_v46 = vmax.f32 %v715_v5, %v1660_v7  ;;  %v788_v21 = vadd.f32 %v787_v62, %v1660_v7  ;;  %v139_v0 = vld [vmem:[#allocation7 + $0xf8] sm:$0xff] }
 0x305   :  { %1805 = vst [vmem:[#allocation25_spill] sm:$0xff] %v1666_v16  ;;  %v725_v50 = vmax.f32 %v724_v12, %v1666_v16  ;;  %v797_v53 = vadd.f32 %v796_v27, %v1666_v16  ;;  %v1676_v20 = vmul.f32 %v630_v24, %v138_v39 }
 0x306   :  { %v712_v22 = vrot.slane %v711_v18, 1  ;;  %v784_v45 = vrot.slane %v783_v52, 1  ;;  %v717_v14 = vrot.slane %v716_v46, 4  ;;  %v789_v8 = vrot.slane %v788_v21, 4 }
 0x307   :  { %v726_v2 = vrot.slane %v725_v50, 4  ;;  %v798_v5 = vrot.slane %v797_v53, 4  ;;  %v733_v12 = vmax.f32 %v732_v49, %v1676_v20  ;;  %v805_v15 = vadd.f32 %v804_v3, %v1676_v20 }
 0x308   :  { %v713_v62 = vmax.f32 %v711_v18, %v712_v22  ;;  %v785_v40 = vadd.f32 %v784_v45, %v783_v52  ;;  %v718_v48 = vmax.f32 %v716_v46, %v717_v14  ;;  %v790_v7 = vadd.f32 %v789_v8, %v788_v21 }
 0x309   :  { %v727_v19 = vmax.f32 %v725_v50, %v726_v2  ;;  %v799_v1 = vadd.f32 %v798_v5, %v797_v53  ;;  %v636_v23 = vpop.permute.xlu1 %635 }
 0x30a   :  { %v719_v9 = vrot.slane %v718_v48, 2  ;;  %v791_v27 = vrot.slane %v790_v7, 2  ;;  %v1679_v16 = vmul.f32 %v636_v23, %v139_v0  ;;  %v883_v39 = vmul.f32 %v1523_v30, %v713_v62 }
 0x30b   :  { %v728_v24 = vrot.slane %v727_v19, 2  ;;  %v800_v63 = vrot.slane %v799_v1, 2  ;;  %v824_v18 = vmul.f32 %v1519_v25, %v785_v40  ;;  %v860_v40 = vsel %vm347_vm4, %v1536_v37, %v1526_v31 }
 0x30c   :  { %v720_v52 = vmax.f32 %v718_v48, %v719_v9  ;;  %v792_v46 = vadd.f32 %v791_v27, %v790_v7  ;;  %v734_v21 = vmax.f32 %v733_v12, %v1679_v16  ;;  %v806_v50 = vadd.f32 %v805_v15, %v1679_v16 }
 0x30d   :  { %v729_v53 = vmax.f32 %v727_v19, %v728_v24  ;;  %v801_v49 = vadd.f32 %v800_v63, %v799_v1  ;;  %v918_v22 = vmul.f32 %v1531_v35, %v824_v18  ;;  %v898_v5 = vsel %vm353_vm7, %v883_v39, %v1612_v44 }
 0x30e   :  { %v721_v23 = vrot.slane %v720_v52, 1  ;;  %v793_v45 = vrot.slane %v792_v46, 1  ;;  %v735_v14 = vrot.slane %v734_v21, 4  ;;  %v807_v3 = vrot.slane %v806_v50, 4 }
 0x30f   :  { %v802_v8 = vrot.slane %v801_v49, 1  ;;  %v730_v2 = vrot.slane %v729_v53, 1  ;;  %v933_v48 = vsel %vm353_vm7, %v918_v22, %v1615_v47  ;;  %v837_v63 = vsel %vm347_vm4, %v1528_v32, %v1521_v26 }
 0x310   :  { %v794_v7 = vadd.f32 %v793_v45, %v792_v46  ;;  %v736_v9 = vmax.f32 %v734_v21, %v735_v14  ;;  %v808_v0 = vadd.f32 %v807_v3, %v806_v50  ;;  %v722_v15 = vmax.f32 %v720_v52, %v721_v23 }
 0x311   :  { %v731_v19 = vmax.f32 %v729_v53, %v730_v2  ;;  %v803_v1 = vadd.f32 %v802_v8, %v801_v49  ;;  %v838_v44 = vsel %vm349_vm5, %v1589_v42, %v837_v63  ;;  %v861_v26 = vsel %vm349_vm5, %v1592_v61, %v860_v40 }
 0x312   :  { %v737_v12 = vrot.slane %v736_v9, 2  ;;  %v809_v27 = vrot.slane %v808_v0, 2  ;;  %v884_v47 = vmul.f32 %v1523_v30, %v722_v15  ;;  %v825_v24 = vmul.f32 %v1519_v25, %v794_v7 }
 0x313   :  { %v885_v39 = vmul.f32 %v1523_v30, %v731_v19  ;;  %v826_v52 = vmul.f32 %v1519_v25, %v803_v1  ;;  %v839_v31 = vsel %vm351_vm6, %v1602_v60, %v838_v44  ;;  %v862_v61 = vsel %vm351_vm6, %v1605_v17, %v861_v26 }
 0x314   :  { %v810_v32 = vadd.f32 %v809_v27, %v808_v0  ;;  %v738_v46 = vmax.f32 %v736_v9, %v737_v12  ;;  %v899_v37 = vsel %vm355_vm8, %v884_v47, %v898_v5  ;;  %v840_v42 = vsel %vm353_vm7, %v713_v62, %v839_v31 }
 0x315   :  { %v919_v21 = vmul.f32 %v1531_v35, %v825_v24  ;;  %v920_v50 = vmul.f32 %v1531_v35, %v826_v52  ;;  %v900_v53 = vsel %vm357_vm9, %v885_v39, %v899_v37  ;;  %v841_v22 = vsel %vm355_vm8, %v722_v15, %v840_v42 }
 0x316   :  { %v739_v49 = vrot.slane %v738_v46, 1  ;;  %v811_v23 = vrot.slane %v810_v32, 1  ;;  %v863_v45 = vsel %vm353_vm7, %v824_v18, %v862_v61  ;;  %v842_v2 = vsel %vm357_vm9, %v731_v19, %v841_v22 }
 0x317   :  { %v934_v60 = vsel %vm355_vm8, %v919_v21, %v933_v48  ;;  %v864_v62 = vsel %vm355_vm8, %v825_v24, %v863_v45  ;;  %v905_v1 = vstv %s1079_s11  ;;  %vm848_vm4 = vcmp.eq.s32.totalorder %v1298_v43, 127 }
 0x318   :  { %v740_v14 = vmax.f32 %v738_v46, %v739_v49  ;;  %v812_v3 = vadd.f32 %v811_v23, %v810_v32  ;;  %v935_v8 = vsel %vm357_vm9, %v920_v50, %v934_v60  ;;  %v865_v17 = vsel %vm357_vm9, %v826_v52, %v864_v62 }
 0x319   :  { %v909_v12 = vstv %s1080_s12  ;;  %v940_v32 = vstv %s1082_s15  ;;  %v944_v21 = vstv %s1782_s7  ;;  %s1234_s7 = smov [#allocation10]  }
 0x31a   :  { %v843_v5 = vsel %vm359_vm10, %v740_v14, %v842_v2  ;;  %v886_v7 = vmul.f32 %v1523_v30, %v740_v14  ;;  %v827_v9 = vmul.f32 %v1519_v25, %v812_v3  ;;  %v875_v30 = vstv %s874_s10  ;;  %s1057_s18 = sshll.u32 %s1234_s7, 4  ;;  %s1058_s18 = int_to_ptr.vmem [resolvable:$true] %s1057_s18 }
 0x31b   :  { %849 = vrot.lane.b32.xlu1 %v843_v5, %s1232_s30  ;;  %845 = vrot.lane.b32.xlu2 %v843_v5, %s1233_s9 }
 0x31c   :  { %v866_v18 = vsel %vm359_vm10, %v827_v9, %v865_v17  ;;  %v921_v48 = vmul.f32 %v1531_v35, %v827_v9  ;;  %v901_v0 = vsel %vm359_vm10, %v886_v7, %v900_v53 }
 0x31d   :  { %868 = vrot.lane.b32.xlu0 %v866_v18, %s1233_s9 }
 0x31e   :  { %v936_v15 = vsel %vm359_vm10, %v921_v48, %v935_v8 }
 0x323   :  { %871 = vrot.lane.b32.xlu2 %v866_v18, %s1232_s30 }
 0x375   :  { %v846_v25 = vpop.permute.xlu2 %845 }
 0x376   :  { %v847_v19 = vsel %vm828_vm3, 0.0, %v846_v25 }
 0x377   :  { %v876_v63 = vmul.f32 %v875_v30, %v847_v19 }
 0x379   :  { %v903_v27 = vadd.f32 %v901_v0, %v876_v63 }
 0x37d   :  { %v872_v44 = vpop.permute.xlu2 %871 }
 0x37e   :  { %v873_v46 = vsel %vm848_vm4, 0.0, %v872_v44 }
 0x37f   :  { %v941_v37 = vmul.f32 %v940_v32, %v873_v46  ;;  %v1809_v46 = vld [vmem:[#allocation19_spill] sm:$0xff] }
 0x38d   :  { %v850_v35 = vpop.permute.xlu1 %849 }
 0x38e   :  { %v851_v40 = vsel %vm848_vm4, 0.0, %v850_v35 }
 0x38f   :  { %v906_v47 = vmul.f32 %v905_v1, %v851_v40  ;;  %v869_v39 = vpop.permute.xlu0 %868 }
 0x390   :  { %v870_v24 = vsel %vm828_vm3, 0.0, %v869_v39  ;;  %v1806_v39 = vld [vmem:[#allocation15_spill] sm:$0xff] }
 0x391   :  { %v907_v52 = vadd.f32 %v906_v47, %v903_v27  ;;  %v910_v26 = vmul.f32 %v909_v12, %v870_v24 }
 0x393   :  { %v911_v31 = vadd.f32 %v910_v26, %v907_v52  ;;  %v1807_v52 = vld [vmem:[#allocation17_spill] sm:$0xff] }
 0x395   :  { %v938_v42 = vadd.f32 %v936_v15, %v911_v31  ;;  %v1810_v31 = vld [vmem:[#allocation23_spill] sm:$0xff] }
 0x397   :  { %v942_v50 = vadd.f32 %v941_v37, %v938_v42 }
 0x399   :  { %v945_v53 = vadd.f32 %v944_v21, %v942_v50  ;;  %v1812_v21 = vld [vmem:[#allocation18_spill] sm:$0xff] }
 0x39b   :  { %v1083_v49 = vmul.f32 -1.442695, %v945_v53  ;;  %v1813_v53 = vld [vmem:[#allocation21_spill] sm:$0xff] }
 0x39d   :  { %1129 = vpow2.f32 %v1083_v49 }
 0x3a3   :  { %v1130_v22 = vpop.eup %1129 }
 0x3a4   :  { %v949_v23 = vadd.f32 1.0, %v1130_v22  ;;  %v1814_v22 = vld [vmem:[#allocation25_spill] sm:$0xff] }
 0x3a6   :  { %1131 = vrcp.f32 %v949_v23  ;;  %v961_v60 = vand.u32 2147483648, %v949_v23  ;;  %v959_v3 = vand.u32 2147483647, %v949_v23  ;;  %vm955_vm6 = vweird.f32 %v949_v23 }
 0x3a8   :  { %v962_v8 = vor.u32 1.1754944e-38, %v961_v60  ;;  %vm960_vm8 = vcmp.eq.f32.partialorder %v959_v3, 8.507059e+37 }
 0x3ac   :  { %v1132_v43 = vpop.eup %1131 }
 0x3ad   :  { %v951_v61 = vmul.f32 %v1132_v43, %v949_v23  ;;  %vm956_vm5 = vweird.f32 %v1132_v43 }
 0x3ae   :  { %vm957_vm7 = vmor %vm955_vm6, %vm956_vm5 }
 0x3af   :  { %v952_v45 = vsub.f32 1.0, %v951_v61 }
 0x3b1   :  { %v953_v14 = vmul.f32 %v1132_v43, %v952_v45  ;;  %v1816_v45 = vld [vmem:[#allocation22_spill] sm:$0xff] }
 0x3b3   :  { %v954_v62 = vadd.f32 %v1132_v43, %v953_v14 }
 0x3b5   :  { %v958_v2 = vsel %vm957_vm7, %v1132_v43, %v954_v62  ;;  %v1815_v43 = vld [vmem:[#allocation24_spill] sm:$0xff] }
 0x3b6   :  { %v963_v5 = vsel %vm960_vm8, %v962_v8, %v958_v2 }
 0x3b7   :  { %v966_v7 = vrot.slane %v963_v5, 1  ;;  %v967_v9 = vrot.slane %v963_v5, 2  ;;  %v973_v17 = vperm.slane %v963_v5, 0  ;;  %v968_v30 = vrot.slane %v963_v5, 3 }
 0x3b8   :  { %v970_v12 = vrot.slane %v963_v5, 5  ;;  %v971_v44 = vrot.slane %v963_v5, 6  ;;  %v972_v24 = vrot.slane %v963_v5, 7 }
 0x3b9   :  { %v974_v18 = vperm.slane %v966_v7, 0  ;;  %v989_v48 = vmul.f32 %v973_v17, %v1481_v29  ;;  %v990_v0 = vmul.f32 %v973_v17, %v1479_v28  ;;  %v991_v15 = vmul.f32 %v973_v17, %v1485_v34 }
 0x3ba   :  { %v992_v25 = vmul.f32 %v973_v17, %v1492_v38  ;;  %v975_v19 = vperm.slane %v967_v9, 0  ;;  %v969_v29 = vrot.slane %v963_v5, 4  ;;  %v976_v28 = vperm.slane %v968_v30, 0 }
 0x3bb   :  { %v993_v63 = vmul.f32 %v974_v18, %v1501_v56  ;;  %1021 = vst [vmem:[#allocation10] sm:$0xff] %v989_v48  ;;  %v994_v1 = vmul.f32 %v974_v18, %v1499_v54  ;;  %v995_v35 = vmul.f32 %v974_v18, %v1503_v57  ;;  %v996_v40 = vmul.f32 %v974_v18, %v1513_v4 }
 0x3bc   :  { %1022 = vst [vmem:[#allocation10 + $0x8] sm:$0xff] %v990_v0  ;;  %v997_v34 = vmul.f32 %v975_v19, %v1557_v58  ;;  %v998_v38 = vmul.f32 %v975_v19, %v1555_v55  ;;  %v999_v56 = vmul.f32 %v975_v19, %v1559_v59  ;;  %v1000_v54 = vmul.f32 %v975_v19, %v1569_v6 }
 0x3bd   :  { %1023 = vst [vmem:[#allocation10 + $0x10] sm:$0xff] %v991_v15  ;;  %v977_v57 = vperm.slane %v969_v29, 0  ;;  %v1001_v27 = vmul.f32 %v976_v28, %v1573_v10  ;;  %v1002_v4 = vmul.f32 %v976_v28, %v1575_v11  ;;  %v1003_v58 = vmul.f32 %v976_v28, %v1577_v13 }
 0x3be   :  { %1024 = vst [vmem:[#allocation10 + $0x18] sm:$0xff] %v992_v25  ;;  %v1004_v55 = vmul.f32 %v976_v28, %v1585_v36  ;;  %v978_v59 = vperm.slane %v970_v12, 0  ;;  %v979_v13 = vperm.slane %v971_v44, 0  ;;  %v1808_v36 = vld [vmem:[#allocation16_spill] sm:$0xff]  ;;  %v980_v37 = vperm.slane %v972_v24, 0 }
 0x3bf   :  { %1025 = vst [vmem:[#allocation10 + $0x20] sm:$0xff] %v993_v63  ;;  %v1005_v47 = vmul.f32 %v977_v57, %v1620_v41  ;;  %v1006_v6 = vmul.f32 %v977_v57, %v1618_v33  ;;  %v1007_v10 = vmul.f32 %v977_v57, %v1626_v51  ;;  %v1008_v11 = vmul.f32 %v977_v57, %v1806_v39  ;;  %v1811_v51 = vld [vmem:[#allocation20_spill] sm:$0xff] }
 0x3c0   :  { %1026 = vst [vmem:[#allocation10 + $0x28] sm:$0xff] %v994_v1  ;;  %v1009_v26 = vmul.f32 %v978_v59, %v1807_v52  ;;  %v1010_v32 = vmul.f32 %v978_v59, %v1808_v36  ;;  %v1011_v41 = vmul.f32 %v978_v59, %v1809_v46  ;;  %v1012_v33 = vmul.f32 %v978_v59, %v1810_v31 }
 0x3c1   :  { %1027 = vst [vmem:[#allocation10 + $0x30] sm:$0xff] %v995_v35  ;;  %v1013_v42 = vmul.f32 %v979_v13, %v1811_v51  ;;  %v1014_v50 = vmul.f32 %v979_v13, %v1812_v21  ;;  %v1015_v49 = vmul.f32 %v979_v13, %v1813_v53  ;;  %v1016_v23 = vmul.f32 %v979_v13, %v1814_v22 }
 0x3c2   :  { %1028 = vst [vmem:[#allocation10 + $0x38] sm:$0xff] %v996_v40  ;;  %v1017_v61 = vmul.f32 %v980_v37, %v1815_v43  ;;  %v1018_v60 = vmul.f32 %v980_v37, %v1816_v45  ;;  %v1019_v14 = vmul.f32 %v980_v37, %v1676_v20  ;;  %v1020_v3 = vmul.f32 %v980_v37, %v1679_v16 }
 0x3c3   :  { %1029 = vst [vmem:[#allocation10 + $0x40] sm:$0xff] %v997_v34 }
 0x3c4   :  { %1030 = vst [vmem:[#allocation10 + $0x48] sm:$0xff] %v998_v38 }
 0x3c5   :  { %1031 = vst [vmem:[#allocation10 + $0x50] sm:$0xff] %v999_v56 }
 0x3c6   :  { %1032 = vst [vmem:[#allocation10 + $0x58] sm:$0xff] %v1000_v54 }
 0x3c7   :  { %1033 = vst [vmem:[#allocation10 + $0x60] sm:$0xff] %v1001_v27 }
 0x3c8   :  { %1034 = vst [vmem:[#allocation10 + $0x68] sm:$0xff] %v1002_v4 }
 0x3c9   :  { %1035 = vst [vmem:[#allocation10 + $0x70] sm:$0xff] %v1003_v58 }
 0x3ca   :  { %1036 = vst [vmem:[#allocation10 + $0x78] sm:$0xff] %v1004_v55 }
 0x3cb   :  { %1037 = vst [vmem:[#allocation10 + $0x80] sm:$0xff] %v1005_v47 }
 0x3cc   :  { %1038 = vst [vmem:[#allocation10 + $0x88] sm:$0xff] %v1006_v6 }
 0x3cd   :  { %1039 = vst [vmem:[#allocation10 + $0x90] sm:$0xff] %v1007_v10 }
 0x3ce   :  { %1040 = vst [vmem:[#allocation10 + $0x98] sm:$0xff] %v1008_v11 }
 0x3cf   :  { %1041 = vst [vmem:[#allocation10 + $0xa0] sm:$0xff] %v1009_v26 }
 0x3d0   :  { %1042 = vst [vmem:[#allocation10 + $0xa8] sm:$0xff] %v1010_v32 }
 0x3d1   :  { %1043 = vst [vmem:[#allocation10 + $0xb0] sm:$0xff] %v1011_v41 }
 0x3d2   :  { %1044 = vst [vmem:[#allocation10 + $0xb8] sm:$0xff] %v1012_v33 }
 0x3d3   :  { %1045 = vst [vmem:[#allocation10 + $0xc0] sm:$0xff] %v1013_v42 }
 0x3d4   :  { %1046 = vst [vmem:[#allocation10 + $0xc8] sm:$0xff] %v1014_v50 }
 0x3d5   :  { %1047 = vst [vmem:[#allocation10 + $0xd0] sm:$0xff] %v1015_v49 }
 0x3d6   :  { %1048 = vst [vmem:[#allocation10 + $0xd8] sm:$0xff] %v1016_v23 }
 0x3d7   :  { %1049 = vst [vmem:[#allocation10 + $0xe0] sm:$0xff] %v1017_v61 }
 0x3d8   :  { %1050 = vst [vmem:[#allocation10 + $0xe8] sm:$0xff] %v1018_v60 }
 0x3d9   :  { %1051 = vst [vmem:[#allocation10 + $0xf0] sm:$0xff] %v1019_v14 }
 0x3da   :  { %1052 = vst [vmem:[#allocation10 + $0xf8] sm:$0xff] %v1020_v3 }
 0x3db   :  { %1065 = dma.vmem_to_hbm [thread:$0]  %s1058_s18, 4096, %s1060_s6, [#allocation5], %s1226_s13, %s1226_s13, %s1227_s14  }
 0x3dc   :  { %1223 = dma.done.wait [#allocation5], 4096  }
 0x3dd   :  { %1224 = vsyncadd [#allocation5], 4294963200 }
 0x3de   :  { %1070 = vsyncpa [#allocation4], 1 }
 0x3df   :  { %1071 = vsyncpa [#allocation8], 1 }
 0x3e0   :  { %1072 = vsyncpa [#allocation5], 1 }
 0x3e1   :  { %1073 = vsyncpa [#allocation6], 1 }

</bundles_post_ra>
